<compile_context>
chip_gen: v7x
topology: tpu7x:2x2x1
jax: 0.10.0
libtpu: 0.0.40
codegen_flags: <defaults>
</compile_context>

<pallas_src>
import jax
import jax.numpy as jnp
from jax.experimental import pallas as pl
from jax.experimental.pallas import tpu as pltpu

_LANES = 128
_SUBLANES = 8
# 8192 rows x 128 lanes: f32 output block = 4 MiB, uint8 input block = 1 MiB.
# Double-buffered: ~10 MiB VMEM -> comfortably under the 32 MiB scoped default
# on v5e/v6e/v7x. Multiple of 32 for native uint8 (32,128) tiling.
_MAX_ROW_TILE = 8192


def _scale_kernel(x_ref, o_ref):
    # Elementwise hot path: cast (e.g. uint8 -> f32) and divide by 255.
    # True division (not mul-by-reciprocal) to mirror torch's .div(255);
    # compute is free here since the kernel is HBM-bound.
    o_ref[...] = x_ref[...].astype(jnp.float32) / jnp.float32(255.0)


def scale_0_255_to_0_1(x):
    """Pallas equivalent of ScaleFrom_0_255_To_0_1.forward.

    Accepts any shape / integer or float dtype; returns float32 of same shape.
    """
    orig_shape = x.shape
    n_elems = int(x.size)
    if n_elems == 0:
        return jnp.zeros(orig_shape, jnp.float32)

    tile_elems = _SUBLANES * _LANES  # 1024
    needs_pad = (n_elems % tile_elems) != 0

    flat = jnp.reshape(x, (-1,))
    if needs_pad:
        # Fallback for ragged sizes: pad to a multiple of (8*128). This costs
        # an extra uint8 copy + f32 slice; the common image-batch case
        # (n_elems % 1024 == 0) skips it entirely.
        # TODO(synk): handle the ragged tail in-kernel (masked store on the
        # last program) to avoid the wrapper pad/slice HBM passes.
        padded_len = ((n_elems + tile_elems - 1) // tile_elems) * tile_elems
        flat = jnp.pad(flat, (0, padded_len - n_elems))
    else:
        padded_len = n_elems

    rows = padded_len // _LANES
    x2d = jnp.reshape(flat, (rows, _LANES))

    # Large fixed tile; cdiv grid lets Pallas mask the partial last block.
    row_tile = rows if rows <= _MAX_ROW_TILE else _MAX_ROW_TILE
    grid = (pl.cdiv(rows, row_tile),)

    out2d = pl.pallas_call(
        _scale_kernel,
        out_shape=jax.ShapeDtypeStruct((rows, _LANES), jnp.float32),
        grid_spec=pltpu.PrefetchScalarGridSpec(
            num_scalar_prefetch=0,
            grid=grid,
            in_specs=[pl.BlockSpec((row_tile, _LANES), lambda i: (i, 0))],
            out_specs=pl.BlockSpec((row_tile, _LANES), lambda i: (i, 0)),
        ),
        compiler_params=pltpu.CompilerParams(
            dimension_semantics=("parallel",),
        ),
    )(x2d)

    if needs_pad:
        out_flat = jnp.reshape(out2d, (-1,))[:n_elems]
        return jnp.reshape(out_flat, orig_shape)
    return jnp.reshape(out2d, orig_shape)


if __name__ == "__main__":
    key = jax.random.PRNGKey(0)
    # NCHW uint8 image batch, values in [0, 255] like FFCV pipeline output.
    x = jax.random.randint(key, (2, 4, 16, 16), 0, 256, dtype=jnp.int32).astype(
        jnp.uint8
    )

    out = scale_0_255_to_0_1(x)
    out = jax.block_until_ready(out)

    # Reference check against plain JAX (mirrors torch .to(float).div(255)).
    ref = x.astype(jnp.float32) / 255.0
    assert out.shape == x.shape
    assert out.dtype == jnp.float32
    assert jnp.allclose(out, ref, atol=1e-6), "mismatch vs reference"

    # Also exercise a ragged size (pad fallback path) for correctness.
    x2 = jax.random.randint(
        jax.random.PRNGKey(1), (3, 5, 7), 0, 256, dtype=jnp.int32
    ).astype(jnp.uint8)
    out2 = jax.block_until_ready(scale_0_255_to_0_1(x2))
    ref2 = x2.astype(jnp.float32) / 255.0
    assert jnp.allclose(out2, ref2, atol=1e-6), "mismatch vs reference (ragged)"

    print("KERNEL_OK")
</pallas_src>

<mosaic_0001>
module attributes {stable_mosaic.version = 11 : i64} {
  func.func @_scale_kernel(%arg0: i32, %arg1: memref<16x128xi8, #tpu.memory_space<vmem>>, %arg2: memref<16x128xf32, #tpu.memory_space<vmem>>) attributes {dimension_semantics = [#tpu.dimension_semantics<parallel>], iteration_bounds = array<i64: 1>, scalar_prefetch = 0 : i64, scratch_operands = 0 : i64, tpu.core_type = #tpu.core_type<tc>, window_params = [{transform_indices = @transform_0, window_bounds = array<i64: 16, 128>}, {transform_indices = @transform_1, window_bounds = array<i64: 16, 128>}]} {
    %c0 = arith.constant 0 : index
    %c0_0 = arith.constant 0 : index
    %0 = vector.load %arg1[%c0, %c0_0] : memref<16x128xi8, #tpu.memory_space<vmem>>, vector<16x128xi8>
    %1 = arith.uitofp %0 : vector<16x128xi8> to vector<16x128xf32>
    %cst = arith.constant 2.550000e+02 : f32
    %2 = vector.broadcast %cst : f32 to vector<16x128xf32>
    %3 = arith.divf %1, %2 : vector<16x128xf32>
    %c0_1 = arith.constant 0 : index
    %c0_2 = arith.constant 0 : index
    %4 = vector.load %arg2[%c0_1, %c0_2] : memref<16x128xf32, #tpu.memory_space<vmem>>, vector<16x128xf32>
    tpu.vector_store %arg2[%c0_1, %c0_2], %3 {strides = array<i32>} : memref<16x128xf32, #tpu.memory_space<vmem>>, vector<16x128xf32>,
    return
  }
  func.func @transform_0(%arg0: i32) -> (i32, i32) {
    %c0_i32 = arith.constant 0 : i32
    %c0_i32_0 = arith.constant 0 : i32
    return %arg0, %c0_i32 : i32, i32
  }
  func.func @transform_1(%arg0: i32) -> (i32, i32) {
    %c0_i32 = arith.constant 0 : i32
    %c0_i32_0 = arith.constant 0 : i32
    return %arg0, %c0_i32 : i32, i32
  }
}

</mosaic_0001>

<bundles_post_ra>
// kernel: tpu_custom_call.1
= control target key start
LH: loop header
LB: loop body
LE: loop exit
PB: predicated region body
PF: predicated region fallthrough
CT: control target
= control target key end

     0   :  { %6 = vsyncpa [#allocation3], 0  ;;  %s151_s0 = inlined_call_operand.hbm [shape: u8[16,128], index: 0, kind: input, shape index: {}]   ;;  %s152_s1 = inlined_call_operand.hbm [shape: f32[16,128], index: 1, kind: output, shape index: {}]  }
   0x1   :  { %7 = vsyncpa [#allocation4], 0  ;;  %s111_s6 = smov [#allocation2]   ;;  %s63_s10 = scalar_lea.hbm %s151_s0, 64 }
   0x2   :  { %s13_s7 = sshll.u32 %s111_s6, 4  ;;  %p64_p0 = scmp.ne.s32.totalorder %s151_s0, %s63_s10  ;;  %s14_s7 = int_to_ptr.vmem [resolvable:$true] %s13_s7 }
   0x3   :  { %p67_p1 = scmp.lt.u32.totalorder %s63_s10, %s151_s0 }
   0x5   :  { %p69_p2 = pnand %p67_p1, %p64_p0 }
   0x7   :  { %72 = shalt.err (!%p69_p2)
}
   0x8   :  { %s73_s15 = scalar_lea.vmem %s14_s7, 64  ;;  %p78_p4 = scmp.lt.s32.totalorder %s14_s7, %s14_s7 }
   0x9   :  { %p74_p3 = scmp.ne.s32.totalorder %s14_s7, %s73_s15  ;;  %p79_p5 = scmp.lt.s32.totalorder %s73_s15, %s73_s15 }
   0xb   :  { %p80_p6 = por %p79_p5, %p78_p4 }
   0xd   :  { %p81_p7 = pnand %p80_p6, %p74_p3 }
   0xf   :  { %84 = shalt.err (!%p81_p7)
}
  0x10   :  { %s112_s16 = smov 32   ;;  %s113_s17 = smov 2  }
  0x11   :  { %19 = dma.hbm_to_vmem [thread:$0]  %s151_s0, 64, %s14_s7, [#allocation3], %s112_s16, %s112_s16, %s113_s17  }
  0x12   :  { %107 = dma.done.wait [#allocation3], 64  }
  0x13   :  { %108 = vsyncadd [#allocation3], 4294967232  ;;  %v54_v0 = vld [vmem:[#allocation2] sm:$0xf]   ;;  %s114_s20 = smov [#allocation5]  }
  0x14   :  { %v55_v1 = vunpack.c.0.s8 %v54_v0  ;;  %v56_v2 = vunpack.c.1.s8 %v54_v0  ;;  %s41_s21 = sshll.u32 %s114_s20, 4  ;;  %s42_s21 = int_to_ptr.vmem [resolvable:$true] %s41_s21 }
  0x15   :  { %s85_s22 = scalar_lea.vmem %s42_s21, 256  ;;  %p90_p9 = scmp.lt.s32.totalorder %s42_s21, %s42_s21 }
  0x16   :  { %v27_v3 = vand.u32 255, %v55_v1  ;;  %v28_v4 = vand.u32 255, %v56_v2  ;;  %p86_p8 = scmp.ne.s32.totalorder %s42_s21, %s85_s22  ;;  %p91_p10 = scmp.lt.s32.totalorder %s85_s22, %s85_s22 }
  0x18   :  { %v29_v5 = vcvt.s32.f32 %v27_v3  ;;  %v30_v6 = vcvt.s32.f32 %v28_v4  ;;  %p92_p11 = por %p91_p10, %p90_p9 }
  0x1a   :  { %v32_v7 = vmul.f32 0.003921569, %v29_v5  ;;  %v33_v8 = vmul.f32 0.003921569, %v30_v6  ;;  %p93_p12 = pnand %p92_p11, %p86_p8 }
  0x1c   :  { %34 = vst [vmem:[#allocation5] sm:$0xff] %v32_v7  ;;  %35 = vst [vmem:[#allocation5 + $0x8] sm:$0xff] %v33_v8 }
  0x1d   :  { %96 = shalt.err (!%p93_p12)
}
  0x1e   :  { %s97_s24 = scalar_lea.hbm %s152_s1, 256 }
  0x1f   :  { %p98_p13 = scmp.ne.s32.totalorder %s152_s1, %s97_s24  ;;  %p101_p0 = scmp.lt.u32.totalorder %s97_s24, %s152_s1 }
  0x21   :  { %p103_p1 = pnand %p101_p0, %p98_p13 }
  0x23   :  { %106 = shalt.err (!%p103_p1)
}
  0x24   :  { %s115_s29 = smov 128   ;;  %s116_s30 = smov 8  }
  0x25   :  { %47 = dma.vmem_to_hbm [thread:$0]  %s42_s21, 256, %s152_s1, [#allocation4], %s115_s29, %s115_s29, %s116_s30  }
  0x26   :  { %109 = dma.done.wait [#allocation4], 256  }
  0x27   :  { %110 = vsyncadd [#allocation4], 4294967040 }
  0x28   :  { %51 = vsyncpa [#allocation3], 1 }
  0x29   :  { %52 = vsyncpa [#allocation4], 1 }

</bundles_post_ra>
